<compile_context>
chip_gen: v7x
topology: tpu7x:2x2x1
jax: 0.10.0
libtpu: 0.0.40
codegen_flags: <defaults>
</compile_context>

<pallas_src>
import jax
import jax.numpy as jnp
from jax.experimental import pallas as pl
from jax.experimental.pallas import tpu as pltpu


def _round_up(x: int, m: int) -> int:
    return ((x + m - 1) // m) * m


def _vmem_budget_bytes() -> int:
    """~75% of this generation's per-core VMEM (headroom for compiler scratch)."""
    try:
        cap = int(pltpu.get_tpu_info().vmem_capacity_bytes)
    except Exception:
        # Hardware introspection unavailable -> assume the smallest (v7x per-TC).
        cap = 64 << 20
    return (cap * 3) // 4


def _projection_kernel(x_ref, wt_ref, b_ref, o_ref):
    """One row tile of o = x @ W.T + b.

    x_ref:  (tm, K)  native dtype (f32/bf16) -- cast to bf16 in-kernel (VPU slot)
    wt_ref: (K, Np)  bf16, W pre-transposed  -- constant block, plain contraction
    b_ref:  (1, Np)  f32
    o_ref:  (tm, Np) out dtype
    """
    x = x_ref[...].astype(wt_ref.dtype)                        # free VPU cast
    acc = jnp.dot(x, wt_ref[...], preferred_element_type=jnp.float32)
    o_ref[...] = (acc + b_ref[...]).astype(o_ref.dtype)        # f32 epilogue, cast


def _select_row_tile(M, K, Np, x_bytes, out_bytes, w_bytes, tm_max, vmem_budget):
    """Largest row tile that fits the per-generation VMEM budget."""
    # Per-row VMEM: double-buffered x and output tiles + in-kernel bf16 copy
    # of x + f32 accumulator.  W/bias counted double-buffered (conservative;
    # their block index never changes so the DMA fires only once anyway).
    per_row = 2 * K * x_bytes + 2 * Np * out_bytes + 2 * K + 4 * Np
    fixed = 2 * K * Np * w_bytes + 2 * Np * 4
    avail = max(vmem_budget - fixed, per_row * 16)
    tm = min(tm_max, avail // per_row)
    if tm >= 256:
        tm = (tm // 256) * 256        # multiple of the v6e/v7x 256-wide MXU (and 128)
    elif tm >= 128:
        tm = 128                      # v5e MXU width
    else:
        tm = max((tm // 16) * 16, 16)

    m16 = _round_up(M, 16)            # 16 sublanes per bf16 vreg
    if m16 <= tm:
        if m16 >= 512:
            # Would be a single grid step: split so the "parallel" row axis
            # actually feeds both v7x TensorCores.
            tm = _round_up(pl.cdiv(m16, 2), 256)
        else:
            tm = m16                  # small M: one block, zero grid overhead
    return tm


def _projection_linear(x, weight, bias, *, tm_max=512,
                       compute_dtype=jnp.bfloat16, out_dtype=None):
    """x: [..., in_dim]; weight: [out_dim, in_dim] (PyTorch); bias: [out_dim]."""
    in_dim = x.shape[-1]
    out_dim, w_in = weight.shape
    assert w_in == in_dim, "weight/in_dim mismatch"
    lead_shape = x.shape[:-1]
    out_dtype = x.dtype if out_dtype is None else jnp.dtype(out_dtype)

    x2 = x.reshape(-1, in_dim)
    M = x2.shape[0]

    # Lane-dense output width: 128 always works (v5e MXU / lane width); use
    # 256 (v6e/v7x MXU width) when the extra padding is small (<15%).
    Np = _round_up(out_dim, 128)
    Np256 = _round_up(out_dim, 256)
    if Np256 != Np and (Np256 - out_dim) <= 0.15 * out_dim:
        Np = Np256

    x_bytes = x2.dtype.itemsize
    w_bytes = jnp.dtype(compute_dtype).itemsize
    out_bytes = jnp.dtype(out_dtype).itemsize
    vmem_budget = _vmem_budget_bytes()
    tm = _select_row_tile(M, in_dim, Np, x_bytes, out_bytes, w_bytes,
                          tm_max, vmem_budget)
    grid = (pl.cdiv(M, tm),)          # boundary block is masked by Pallas

    # One cheap pass over the small, constant W / bias: pad N to the
    # lane-dense width, cast to the MXU dtype, and pre-transpose so the
    # kernel does a plain (tm,K)x(K,Np) contraction (no in-kernel transpose).
    wt = jnp.pad(weight, ((0, Np - out_dim), (0, 0))).astype(compute_dtype).T
    bp = jnp.pad(bias.astype(jnp.float32), (0, Np - out_dim)).reshape(1, Np)

    cost = pl.CostEstimate(
        flops=2 * M * in_dim * Np,
        transcendentals=0,
        bytes_accessed=(M * in_dim * x_bytes + in_dim * Np * w_bytes
                        + Np * 4 + M * Np * out_bytes))

    out = pl.pallas_call(
        _projection_kernel,
        out_shape=jax.ShapeDtypeStruct((M, Np), out_dtype),
        grid_spec=pltpu.PrefetchScalarGridSpec(
            num_scalar_prefetch=0,
            grid=grid,
            in_specs=[
                pl.BlockSpec((tm, in_dim), lambda i: (i, 0)),  # x row tile (native dtype)
                pl.BlockSpec((in_dim, Np), lambda i: (0, 0)),  # W^T, constant block
                pl.BlockSpec((1, Np), lambda i: (0, 0)),       # bias, constant block
            ],
            out_specs=pl.BlockSpec((tm, Np), lambda i: (i, 0)),
        ),
        compiler_params=pltpu.CompilerParams(
            dimension_semantics=("parallel",),   # shard row blocks across TCs
            vmem_limit_bytes=vmem_budget,
        ),
        cost_estimate=cost,
    )(x2, wt, bp)

    if Np != out_dim:
        # TODO(synk): for very large M with unaligned out_dim, a masked-store
        # full-width output block may beat this unpad pass; pick per shape.
        out = out[:, :out_dim]
    return out.reshape(*lead_shape, out_dim)


def text_projection_embedding(x, weight, bias, *, tm_max=512,
                              compute_dtype=jnp.bfloat16, out_dtype=None):
    """Fused Linear projection (TextEmbedding emb_type='projection', module='linear')."""
    return _projection_linear(x, weight, bias, tm_max=tm_max,
                              compute_dtype=compute_dtype, out_dtype=out_dtype)


class TextEmbedding:
    """JAX/Pallas port of mmf TextEmbedding's forward dispatch.

    Implemented: emb_type="projection" (module="linear") -> Pallas GEMM+bias,
    and emb_type="identity" -> passthrough.
    # TODO(synk): "vocab"/"torch" (embedding gather), "bilstm"/"attention"
    #   (LSTM/GRU recurrence), "preextracted" (disk cache) not ported.
    """

    def __init__(self, emb_type, **kwargs):
        self.emb_type = emb_type
        if emb_type == "identity":
            self.text_out_dim = kwargs.get("embedding_dim")
        elif emb_type == "projection":
            if kwargs.get("module", "linear") != "linear":
                raise NotImplementedError("only module='linear' is ported")
            self.weight = kwargs["weight"]      # [out_dim, in_dim]
            self.bias = kwargs["bias"]          # [out_dim]
            self.out_dtype = kwargs.get("out_dtype", None)
            self.text_out_dim = self.weight.shape[0]
        else:
            raise NotImplementedError(
                f"emb_type '{emb_type}' has no Pallas port in this script")

    def __call__(self, x):
        if self.emb_type == "identity":
            return x
        return text_projection_embedding(x, self.weight, self.bias,
                                         out_dtype=self.out_dtype)


if __name__ == "__main__":
    key = jax.random.PRNGKey(0)
    k_x, k_w, k_b, k_x2, k_w2, k_b2, k_x3, k_w3, k_b3 = jax.random.split(key, 9)

    # --- test 1: TextEmbedding('projection', linear), small shapes ---------
    B, S, in_dim, out_dim = 2, 8, 32, 64
    x = jax.random.normal(k_x, (B, S, in_dim), dtype=jnp.float32)
    weight = jax.random.normal(k_w, (out_dim, in_dim), dtype=jnp.float32) * 0.05
    bias = jax.random.normal(k_b, (out_dim,), dtype=jnp.float32) * 0.05

    emb = TextEmbedding("projection", module="linear", weight=weight, bias=bias)
    out = jax.block_until_ready(emb(x))

    ref = jnp.einsum("...k,nk->...n", x, weight) + bias
    assert out.shape == (B, S, out_dim)
    assert out.dtype == x.dtype
    # bf16 MXU inputs with f32 accumulation: loose-ish tolerance.
    assert jnp.allclose(out, ref, atol=1e-2, rtol=1e-2), "mismatch vs reference (1)"

    # --- test 2: ragged dims + multi-step row grid (masked boundary block) --
    xb = jax.random.normal(k_x2, (3, 7, 20), dtype=jnp.float32)
    wb = jax.random.normal(k_w2, (50, 20), dtype=jnp.float32) * 0.05
    bb = jax.random.normal(k_b2, (50,), dtype=jnp.float32) * 0.05
    out2 = jax.block_until_ready(
        text_projection_embedding(xb, wb, bb, tm_max=16))   # forces grid > 1
    ref2 = jnp.einsum("...k,nk->...n", xb, wb) + bb
    assert out2.shape == (3, 7, 50)
    assert jnp.allclose(out2, ref2, atol=1e-2, rtol=1e-2), "mismatch vs reference (2)"

    # --- test 3: 128-aligned out_dim (no unpad slice) + bf16 output --------
    xc = jax.random.normal(k_x3, (4, 8, 64), dtype=jnp.float32)
    wc = jax.random.normal(k_w3, (128, 64), dtype=jnp.float32) * 0.05
    bc = jax.random.normal(k_b3, (128,), dtype=jnp.float32) * 0.05
    out3 = jax.block_until_ready(
        text_projection_embedding(xc, wc, bc, out_dtype=jnp.bfloat16))
    ref3 = jnp.einsum("...k,nk->...n", xc, wc) + bc
    assert out3.shape == (4, 8, 128)
    assert out3.dtype == jnp.bfloat16
    assert jnp.allclose(out3.astype(jnp.float32), ref3, atol=3e-2, rtol=3e-2), \
        "mismatch vs reference (3)"

    # --- identity branch (no kernel) ----------------------------------------
    ident = TextEmbedding("identity", embedding_dim=in_dim)
    assert jnp.array_equal(ident(x), x)

    print("KERNEL_OK")
</pallas_src>

<mosaic_0001>
module attributes {stable_mosaic.version = 11 : i64} {
  func.func @_projection_kernel(%arg0: i32, %arg1: memref<16x32xf32, #tpu.memory_space<vmem>>, %arg2: memref<32x128xbf16, #tpu.memory_space<vmem>>, %arg3: memref<1x128xf32, #tpu.memory_space<vmem>>, %arg4: memref<16x128xf32, #tpu.memory_space<vmem>>) attributes {dimension_semantics = [#tpu.dimension_semantics<parallel>], iteration_bounds = array<i64: 1>, scalar_prefetch = 0 : i64, scratch_operands = 0 : i64, tpu.core_type = #tpu.core_type<tc>, window_params = [{transform_indices = @transform_0, window_bounds = array<i64: 16, 32>}, {pipeline_mode = #tpu.pipeline_mode<synchronous>, transform_indices = @transform_1, window_bounds = array<i64: 32, 128>}, {pipeline_mode = #tpu.pipeline_mode<synchronous>, transform_indices = @transform_2, window_bounds = array<i64: 1, 128>}, {transform_indices = @transform_3, window_bounds = array<i64: 16, 128>}]} {
    %c0 = arith.constant 0 : index
    %c0_0 = arith.constant 0 : index
    %0 = vector.load %arg1[%c0, %c0_0] : memref<16x32xf32, #tpu.memory_space<vmem>>, vector<16x32xf32>
    %1 = arith.truncf %0 : vector<16x32xf32> to vector<16x32xbf16>
    %c0_1 = arith.constant 0 : index
    %c0_2 = arith.constant 0 : index
    %2 = vector.load %arg2[%c0_1, %c0_2] : memref<32x128xbf16, #tpu.memory_space<vmem>>, vector<32x128xbf16>
    %cst = arith.constant dense<0.000000e+00> : vector<16x128xf32>
    %3 = tpu.matmul %1, %2, %cst {dimension_numbers = #tpu.dot_dimension_numbers<[1], [0], [0], [1], [0, 0, 1, 1], [], []>} : vector<16x32xbf16>, vector<32x128xbf16>, vector<16x128xf32> -> vector<16x128xf32>
    %c0_3 = arith.constant 0 : index
    %c0_4 = arith.constant 0 : index
    %4 = vector.load %arg3[%c0_3, %c0_4] : memref<1x128xf32, #tpu.memory_space<vmem>>, vector<1x128xf32>
    %5 = vector.broadcast %4 : vector<1x128xf32> to vector<16x128xf32>
    %6 = arith.addf %3, %5 : vector<16x128xf32>
    %c0_5 = arith.constant 0 : index
    %c0_6 = arith.constant 0 : index
    %7 = vector.load %arg4[%c0_5, %c0_6] : memref<16x128xf32, #tpu.memory_space<vmem>>, vector<16x128xf32>
    tpu.vector_store %arg4[%c0_5, %c0_6], %6 {strides = array<i32>} : memref<16x128xf32, #tpu.memory_space<vmem>>, vector<16x128xf32>,
    return
  }
  func.func @transform_0(%arg0: i32) -> (i32, i32) {
    %c0_i32 = arith.constant 0 : i32
    %c0_i32_0 = arith.constant 0 : i32
    return %arg0, %c0_i32 : i32, i32
  }
  func.func @transform_1(%arg0: i32) -> (i32, i32) {
    %c0_i32 = arith.constant 0 : i32
    %c0_i32_0 = arith.constant 0 : i32
    %c0_i32_1 = arith.constant 0 : i32
    return %c0_i32, %c0_i32_0 : i32, i32
  }
  func.func @transform_2(%arg0: i32) -> (i32, i32) {
    %c0_i32 = arith.constant 0 : i32
    %c0_i32_0 = arith.constant 0 : i32
    %c0_i32_1 = arith.constant 0 : i32
    return %c0_i32, %c0_i32_0 : i32, i32
  }
  func.func @transform_3(%arg0: i32) -> (i32, i32) {
    %c0_i32 = arith.constant 0 : i32
    %c0_i32_0 = arith.constant 0 : i32
    return %arg0, %c0_i32 : i32, i32
  }
}

</mosaic_0001>

<bundles_post_ra>
// kernel: tpu_custom_call.1
= control target key start
LH: loop header
LB: loop body
LE: loop exit
PB: predicated region body
PF: predicated region fallthrough
CT: control target
= control target key end

     0   :  { %8 = vsyncpa [#allocation3], 0  ;;  %s307_s0 = inlined_call_operand.hbm [shape: f32[16,32], index: 0, kind: input, shape index: {}]   ;;  %s308_s1 = inlined_call_operand.hbm [shape: bf16[32,128], index: 1, kind: input, shape index: {}]   ;;  %s309_s2 = inlined_call_operand.vmem [shape: f32[1,128], index: 2, kind: input, shape index: {}]   ;;  %s310_s3 = inlined_call_operand.hbm [shape: f32[16,128], index: 3, kind: output, shape index: {}]  }
   0x1   :  { %9 = vsyncpa [#allocation6], 0 }
   0x2   :  { %10 = vsyncpa [#allocation4], 0  ;;  %s233_s12 = smov [#allocation2]   ;;  %s161_s16 = scalar_lea.hbm %s307_s0, 256 }
   0x3   :  { %s16_s13 = sshll.u32 %s233_s12, 4  ;;  %p162_p0 = scmp.ne.s32.totalorder %s307_s0, %s161_s16  ;;  %s17_s13 = int_to_ptr.vmem [resolvable:$true] %s16_s13 }
   0x4   :  { %p165_p1 = scmp.lt.u32.totalorder %s161_s16, %s307_s0 }
   0x6   :  { %p167_p2 = pnand %p165_p1, %p162_p0 }
   0x8   :  { %170 = shalt.err (!%p167_p2)
}
   0x9   :  { %s171_s21 = scalar_lea.vmem %s17_s13, 256  ;;  %p176_p4 = scmp.lt.s32.totalorder %s17_s13, %s17_s13 }
   0xa   :  { %p172_p3 = scmp.ne.s32.totalorder %s17_s13, %s171_s21  ;;  %p177_p5 = scmp.lt.s32.totalorder %s171_s21, %s171_s21 }
   0xc   :  { %p178_p6 = por %p177_p5, %p176_p4 }
   0xe   :  { %p179_p7 = pnand %p178_p6, %p172_p3 }
  0x10   :  { %182 = shalt.err (!%p179_p7)
}
  0x11   :  { %s234_s22 = smov 128   ;;  %s235_s23 = smov 8  }
  0x12   :  { %22 = dma.hbm_to_vmem [thread:$0]  %s307_s0, 256, %s17_s13, [#allocation3], %s234_s22, %s234_s22, %s235_s23  }
  0x13   :  { %s236_s26 = smov [#allocation5]   ;;  %s183_s30 = scalar_lea.hbm %s308_s1, 256 }
  0x14   :  { %s28_s27 = sshll.u32 %s236_s26, 4  ;;  %p184_p8 = scmp.ne.s32.totalorder %s308_s1, %s183_s30  ;;  %s29_s27 = int_to_ptr.vmem [resolvable:$true] %s28_s27 }
  0x15   :  { %p187_p9 = scmp.lt.u32.totalorder %s183_s30, %s308_s1 }
  0x17   :  { %p189_p10 = pnand %p187_p9, %p184_p8 }
  0x19   :  { %192 = shalt.err (!%p189_p10)
}
  0x1a   :  { %s193_s8 = scalar_lea.vmem %s29_s27, 256  ;;  %p198_p12 = scmp.lt.s32.totalorder %s29_s27, %s29_s27 }
  0x1b   :  { %p194_p11 = scmp.ne.s32.totalorder %s29_s27, %s193_s8  ;;  %p199_p13 = scmp.lt.s32.totalorder %s193_s8, %s193_s8 }
  0x1d   :  { %p200_p0 = por %p199_p13, %p198_p12 }
  0x1f   :  { %p201_p1 = pnand %p200_p0, %p194_p11 }
  0x21   :  { %204 = shalt.err (!%p201_p1)
}
  0x22   :  { %s237_s0 = smov 64   ;;  %s238_s9 = smov 4  }
  0x23   :  { %34 = dma.hbm_to_vmem [thread:$0]  %s308_s1, 256, %s29_s27, [#allocation6], %s237_s0, %s237_s0, %s238_s9  }
  0x24   :  { %227 = dma.done.wait [#allocation3], 256  }
  0x25   :  { %228 = vsyncadd [#allocation3], 4294967040 }
  0x26   :  { %229 = dma.done.wait [#allocation6], 256  }
  0x27   :  { %230 = vsyncadd [#allocation6], 4294967040  ;;  %v239_v0 = vmov 0.0   ;;  %vm240_vm0 = vmmov 0   ;;  %v159_v1 = vld [vmem:[#allocation5] sm:$0xff]   ;;  %v160_v2 = vld [vmem:[#allocation5 + $0x8] sm:$0xff]  }
  0x28   :  { %142 = vmatprep.subr.bf16.mxu0 %v239_v0  ;;  %146 = vmatprep.mubr.msk.bf16.mxu0 %vm240_vm0, %v239_v0  ;;  %v44_v3 = vld [vmem:[#allocation2] sm:$0xff]  ;;  %v45_v4 = vld [vmem:[#allocation2 + $0x8] sm:$0xff]  ;;  %vm70_vm1 = vcmask 261120   ;;  %s241_s13 = smov [#allocation7]  }
  0x29   :  { %143 = vmatpush3.bf16.msra.mxu0 %v159_v1  ;;  %v46_v5 = vpack.c.bf16 %v45_v4, %v44_v3  ;;  %v135_v6 = vld [vmem:[%s309_s2] ss:$0 sm:$0xff]  ;;  %s122_s14 = sshll.u32 %s241_s13, 4  ;;  %s123_s14 = int_to_ptr.vmem [resolvable:$true] %s122_s14 }
  0x2a   :  { %144 = vmatprep.subr.bf16.mxu0 %v239_v0  ;;  %s205_s15 = scalar_lea.vmem %s123_s14, 256  ;;  %p210_p3 = scmp.lt.s32.totalorder %s123_s14, %s123_s14 }
  0x2b   :  { %p206_p2 = scmp.ne.s32.totalorder %s123_s14, %s205_s15  ;;  %p211_p4 = scmp.lt.s32.totalorder %s205_s15, %s205_s15 }
  0x2d   :  { %145 = vmatpush3.bf16.msra.mxu0 %v160_v2  ;;  %p212_p5 = por %p211_p4, %p210_p3 }
  0x2f   :  { %p213_p6 = pnand %p212_p5, %p206_p2 }
  0x30   :  { %147 = vmatmul.mubr.msk.bf16.vlgmr.msra.gmra.mrb[0].mxu0 %vm70_vm1, %v46_v5 }
 0x103   :  { %v108_v7 = vpop.f32.mrb[0].mxu0 }
 0x104   :  { %v109_v8 = vadd.f32 %v135_v6, %v108_v7  ;;  %v148_v9 = vpop.f32.mrb[1].mxu0 }
 0x105   :  { %v111_v10 = vpop.f32.mrb[2].mxu0 }
 0x106   :  { %115 = vst [vmem:[#allocation7] sm:$0xff] %v109_v8  ;;  %v112_v11 = vadd.f32 %v135_v6, %v111_v10  ;;  %v149_v12 = vpop.f32.mrb[3].mxu0 }
 0x108   :  { %116 = vst [vmem:[#allocation7 + $0x8] sm:$0xff] %v112_v11 }
 0x109   :  { %216 = shalt.err (!%p213_p6)
}
 0x10a   :  { %s217_s17 = scalar_lea.hbm %s310_s3, 256 }
 0x10b   :  { %p218_p7 = scmp.ne.s32.totalorder %s310_s3, %s217_s17  ;;  %p221_p8 = scmp.lt.u32.totalorder %s217_s17, %s310_s3 }
 0x10d   :  { %p223_p9 = pnand %p221_p8, %p218_p7 }
 0x10f   :  { %226 = shalt.err (!%p223_p9)
}
 0x110   :  { %128 = dma.vmem_to_hbm [thread:$0]  %s123_s14, 256, %s310_s3, [#allocation4], %s234_s22, %s234_s22, %s235_s23  }
 0x111   :  { %231 = dma.done.wait [#allocation4], 256  }
 0x112   :  { %232 = vsyncadd [#allocation4], 4294967040 }
 0x113   :  { %132 = vsyncpa [#allocation3], 1 }
 0x114   :  { %133 = vsyncpa [#allocation6], 1 }
 0x115   :  { %134 = vsyncpa [#allocation4], 1 }

</bundles_post_ra>
